<compile_context>
chip_gen: v7x
topology: tpu7x:2x2x1
jax: 0.10.0
libtpu: 0.0.40
codegen_flags: <defaults>
</compile_context>

<pallas_src>
import math

import jax
import jax.numpy as jnp
from jax.experimental import pallas as pl
from jax.experimental.pallas import tpu as pltpu


def _erf(x):
    # Abramowitz & Stegun 7.1.26 polynomial erf (max abs error ~1.5e-7), f32.
    # Reciprocal goes to the EUP (approx) with one Newton refinement so the
    # VALU cost of GELU on the (tm, tn) intermediate stays low.
    a1, a2, a3, a4, a5 = (0.254829592, -0.284496736, 1.421413741,
                          -1.453152027, 1.061405429)
    p = 0.3275911
    ax = jnp.abs(x)
    d = 1.0 + p * ax
    t = pl.reciprocal(d, approx=True)
    t = t * (2.0 - d * t)                     # Newton step: rel err ~1e-7
    poly = ((((a5 * t + a4) * t + a3) * t + a2) * t + a1) * t
    y = 1.0 - poly * jnp.exp(-ax * ax)
    return jnp.where(x >= 0, y, -y)


def _gelu_exact(x):
    # Matches torch.nn.functional.gelu default (erf-based, not tanh approx).
    return 0.5 * x * (1.0 + _erf(x * (1.0 / math.sqrt(2.0))))


def _mlp_kernel(x_ref, w1_ref, b1_ref, w2_ref, b2_ref, o_ref, acc_ref):
    # Grid: (token tiles [parallel], mlp_dim slabs [arbitrary]).
    n = pl.program_id(1)

    @pl.when(n == 0)
    def _init():
        acc_ref[...] = jnp.zeros_like(acc_ref)

    # Partial fc1 slab: contraction over the full H, so bias + GELU per slab is exact.
    h = jnp.dot(x_ref[...], w1_ref[...],
                preferred_element_type=jnp.float32)           # (tm, tn) f32
    h = _gelu_exact(h + b1_ref[...])                          # f32 bias + GELU
    # dropout -> identity (inference)
    acc_ref[...] += jnp.dot(h.astype(w2_ref.dtype), w2_ref[...],
                            preferred_element_type=jnp.float32)

    @pl.when(n == pl.num_programs(1) - 1)
    def _finalize():
        o_ref[...] = (acc_ref[...] + b2_ref[...]).astype(o_ref.dtype)


def _round_up(v, m):
    return ((v + m - 1) // m) * m


def _pick_token_tile(M, block_rows):
    # >=2 token tiles whenever M allows (keeps both v7x TensorCores busy);
    # tiles are multiples of 16 (bf16 sublane packing), capped at block_rows.
    if M <= 16:
        return M
    return min(block_rows, _round_up(pl.cdiv(M, 2), 16))


def _pick_slab(mlp_dim, slab_cols):
    # Largest MXU-friendly slab that divides mlp_dim exactly (padding on the
    # accumulated axis would corrupt the output, so exact division only).
    for cand in (slab_cols, 512, 384, 256, 128):
        if cand <= mlp_dim and mlp_dim % cand == 0:
            return cand
    return mlp_dim


def mlp_forward(x, params, *, block_rows=256, slab_cols=512):
    """x: (B, S, H) f32.  params: w1 (H, mlp), b1 (mlp,), w2 (mlp, H), b2 (H,)."""
    B, S, H = x.shape
    mlp_dim = params['w1'].shape[1]
    M = B * S

    # bf16 MXU operands (f32 accumulation in-kernel); biases stay f32.
    x2 = x.reshape(M, H).astype(jnp.bfloat16)
    w1 = params['w1'].astype(jnp.bfloat16)
    w2 = params['w2'].astype(jnp.bfloat16)
    b1 = params['b1'].reshape(1, mlp_dim).astype(jnp.float32)
    b2 = params['b2'].reshape(1, H).astype(jnp.float32)

    tm = _pick_token_tile(M, block_rows)
    tn = _pick_slab(mlp_dim, slab_cols)
    grid = (pl.cdiv(M, tm), mlp_dim // tn)

    out = pl.pallas_call(
        _mlp_kernel,
        out_shape=jax.ShapeDtypeStruct((M, H), x.dtype),
        grid=grid,
        in_specs=[
            pl.BlockSpec((tm, H), lambda i, n: (i, 0)),        # token tile
            pl.BlockSpec((H, tn), lambda i, n: (0, n)),        # w1 slab
            pl.BlockSpec((1, tn), lambda i, n: (0, n)),        # b1 slab
            pl.BlockSpec((tn, H), lambda i, n: (n, 0)),        # w2 slab
            pl.BlockSpec((1, H), lambda i, n: (0, 0)),         # b2
        ],
        out_specs=pl.BlockSpec((tm, H), lambda i, n: (i, 0)),
        scratch_shapes=[pltpu.VMEM((tm, H), jnp.float32)],     # fc2 accumulator
        compiler_params=pltpu.CompilerParams(
            dimension_semantics=("parallel", "arbitrary"),
            vmem_limit_bytes=48 * 1024 * 1024),                # safe on 64 MiB v7x
    )(x2, w1, b1, w2, b2)

    return out.reshape(B, S, H)


def _reference(x, params):
    h = jnp.einsum('bsh,hm->bsm', x, params['w1']) + params['b1']
    h = jax.nn.gelu(h, approximate=False)          # torch default: exact erf GELU
    return jnp.einsum('bsm,mh->bsh', h, params['w2']) + params['b2']


if __name__ == "__main__":
    # Small config consistent with the module: hidden_size=32, mlp_dim=128, seq=8.
    B, S, H, MLP = 2, 8, 32, 128

    key = jax.random.PRNGKey(0)
    k_x, k_w1, k_b1, k_w2, k_b2 = jax.random.split(key, 5)
    x = jax.random.normal(k_x, (B, S, H), dtype=jnp.float32)

    def xavier_uniform(k, fan_in, fan_out):
        lim = math.sqrt(6.0 / (fan_in + fan_out))
        return jax.random.uniform(k, (fan_in, fan_out), jnp.float32, -lim, lim)

    params = {
        'w1': xavier_uniform(k_w1, H, MLP),
        'b1': jax.random.normal(k_b1, (MLP,), jnp.float32) * 1e-6,
        'w2': xavier_uniform(k_w2, MLP, H),
        'b2': jax.random.normal(k_b2, (H,), jnp.float32) * 1e-6,
    }

    out = jax.block_until_ready(mlp_forward(x, params))
    ref = _reference(x, params)

    assert out.shape == (B, S, H)
    # bf16 MXU operands vs f32 reference -> bf16-scale tolerance.
    assert jnp.allclose(out, ref, atol=2e-2, rtol=2e-2), \
        float(jnp.max(jnp.abs(out - ref)))

    print("KERNEL_OK")
</pallas_src>

<mosaic_0001>
module attributes {stable_mosaic.version = 11 : i64} {
  func.func @_mlp_kernel(%arg0: i32, %arg1: i32, %arg2: memref<16x32xbf16, #tpu.memory_space<vmem>>, %arg3: memref<32x128xbf16, #tpu.memory_space<vmem>>, %arg4: memref<1x128xf32, #tpu.memory_space<vmem>>, %arg5: memref<128x32xbf16, #tpu.memory_space<vmem>>, %arg6: memref<1x32xf32, #tpu.memory_space<vmem>>, %arg7: memref<16x32xf32, #tpu.memory_space<vmem>>, %arg8: memref<16x32xf32, #tpu.memory_space<vmem>>) attributes {dimension_semantics = [#tpu.dimension_semantics<parallel>, #tpu.dimension_semantics<arbitrary>], iteration_bounds = array<i64: 1, 1>, scalar_prefetch = 0 : i64, scratch_operands = 1 : i64, tpu.core_type = #tpu.core_type<tc>, window_params = [{transform_indices = @transform_0, window_bounds = array<i64: 16, 32>}, {transform_indices = @transform_1, window_bounds = array<i64: 32, 128>}, {transform_indices = @transform_2, window_bounds = array<i64: 1, 128>}, {transform_indices = @transform_3, window_bounds = array<i64: 128, 32>}, {pipeline_mode = #tpu.pipeline_mode<synchronous>, transform_indices = @transform_4, window_bounds = array<i64: 1, 32>}, {transform_indices = @transform_5, window_bounds = array<i64: 16, 32>}]} {
    %c0_i32 = arith.constant 0 : i32
    %0 = arith.cmpi eq, %arg1, %c0_i32 : i32
    %1 = arith.extui %0 : i1 to i32
    %c0_i32_0 = arith.constant 0 : i32
    %2 = arith.cmpi ne, %1, %c0_i32_0 : i32
    scf.if %2 {
      %cst_30 = arith.constant 0.000000e+00 : f32
      %61 = vector.broadcast %cst_30 : f32 to vector<16x32xf32>
      %c0_31 = arith.constant 0 : index
      %c0_32 = arith.constant 0 : index
      %62 = vector.load %arg8[%c0_31, %c0_32] : memref<16x32xf32, #tpu.memory_space<vmem>>, vector<16x32xf32>
      tpu.vector_store %arg8[%c0_31, %c0_32], %61 {strides = array<i32>} : memref<16x32xf32, #tpu.memory_space<vmem>>, vector<16x32xf32>,
    } else {
    }
    %c0 = arith.constant 0 : index
    %c0_1 = arith.constant 0 : index
    %3 = vector.load %arg2[%c0, %c0_1] : memref<16x32xbf16, #tpu.memory_space<vmem>>, vector<16x32xbf16>
    %c0_2 = arith.constant 0 : index
    %c0_3 = arith.constant 0 : index
    %4 = vector.load %arg3[%c0_2, %c0_3] : memref<32x128xbf16, #tpu.memory_space<vmem>>, vector<32x128xbf16>
    %cst = arith.constant dense<0.000000e+00> : vector<16x128xf32>
    %5 = tpu.matmul %3, %4, %cst {dimension_numbers = #tpu.dot_dimension_numbers<[1], [0], [0], [1], [0, 0, 1, 1], [], []>} : vector<16x32xbf16>, vector<32x128xbf16>, vector<16x128xf32> -> vector<16x128xf32>
    %c0_4 = arith.constant 0 : index
    %c0_5 = arith.constant 0 : index
    %6 = vector.load %arg4[%c0_4, %c0_5] : memref<1x128xf32, #tpu.memory_space<vmem>>, vector<1x128xf32>
    %7 = vector.broadcast %6 : vector<1x128xf32> to vector<16x128xf32>
    %8 = arith.addf %5, %7 : vector<16x128xf32>
    %cst_6 = arith.constant 5.000000e-01 : f32
    %9 = vector.broadcast %cst_6 : f32 to vector<16x128xf32>
    %10 = arith.mulf %9, %8 : vector<16x128xf32>
    %cst_7 = arith.constant 0.707106769 : f32
    %11 = vector.broadcast %cst_7 : f32 to vector<16x128xf32>
    %12 = arith.mulf %8, %11 : vector<16x128xf32>
    %13 = math.absf %12 : vector<16x128xf32>
    %cst_8 = arith.constant 0.327591091 : f32
    %14 = vector.broadcast %cst_8 : f32 to vector<16x128xf32>
    %15 = arith.mulf %14, %13 : vector<16x128xf32>
    %cst_9 = arith.constant 1.000000e+00 : f32
    %16 = vector.broadcast %cst_9 : f32 to vector<16x128xf32>
    %17 = arith.addf %16, %15 : vector<16x128xf32>
    %18 = tpu.reciprocal %17 {approx = true} : vector<16x128xf32> -> vector<16x128xf32>
    %19 = arith.mulf %17, %18 : vector<16x128xf32>
    %cst_10 = arith.constant 2.000000e+00 : f32
    %20 = vector.broadcast %cst_10 : f32 to vector<16x128xf32>
    %21 = arith.subf %20, %19 : vector<16x128xf32>
    %22 = arith.mulf %18, %21 : vector<16x128xf32>
    %cst_11 = arith.constant 1.06140542 : f32
    %23 = vector.broadcast %cst_11 : f32 to vector<16x128xf32>
    %24 = arith.mulf %23, %22 : vector<16x128xf32>
    %cst_12 = arith.constant -1.45315206 : f32
    %25 = vector.broadcast %cst_12 : f32 to vector<16x128xf32>
    %26 = arith.addf %24, %25 : vector<16x128xf32>
    %27 = arith.mulf %26, %22 : vector<16x128xf32>
    %cst_13 = arith.constant 1.42141378 : f32
    %28 = vector.broadcast %cst_13 : f32 to vector<16x128xf32>
    %29 = arith.addf %27, %28 : vector<16x128xf32>
    %30 = arith.mulf %29, %22 : vector<16x128xf32>
    %cst_14 = arith.constant -0.284496725 : f32
    %31 = vector.broadcast %cst_14 : f32 to vector<16x128xf32>
    %32 = arith.addf %30, %31 : vector<16x128xf32>
    %33 = arith.mulf %32, %22 : vector<16x128xf32>
    %cst_15 = arith.constant 0.254829586 : f32
    %34 = vector.broadcast %cst_15 : f32 to vector<16x128xf32>
    %35 = arith.addf %33, %34 : vector<16x128xf32>
    %36 = arith.mulf %35, %22 : vector<16x128xf32>
    %cst_16 = arith.constant 0.000000e+00 : f32
    %37 = vector.broadcast %cst_16 : f32 to vector<16x128xf32>
    %38 = arith.subf %37, %13 : vector<16x128xf32>
    %39 = arith.mulf %38, %13 : vector<16x128xf32>
    %40 = math.exp %39 : vector<16x128xf32>
    %41 = arith.mulf %36, %40 : vector<16x128xf32>
    %cst_17 = arith.constant 1.000000e+00 : f32
    %42 = vector.broadcast %cst_17 : f32 to vector<16x128xf32>
    %43 = arith.subf %42, %41 : vector<16x128xf32>
    %cst_18 = arith.constant 0.000000e+00 : f32
    %44 = vector.broadcast %cst_18 : f32 to vector<16x128xf32>
    %45 = arith.cmpf oge, %12, %44 : vector<16x128xf32>
    %cst_19 = arith.constant 0.000000e+00 : f32
    %46 = vector.broadcast %cst_19 : f32 to vector<16x128xf32>
    %47 = arith.subf %46, %43 : vector<16x128xf32>
    %48 = arith.select %45, %43, %47 : vector<16x128xi1>, vector<16x128xf32>
    %cst_20 = arith.constant 1.000000e+00 : f32
    %49 = vector.broadcast %cst_20 : f32 to vector<16x128xf32>
    %50 = arith.addf %49, %48 : vector<16x128xf32>
    %51 = arith.mulf %10, %50 : vector<16x128xf32>
    %c0_21 = arith.constant 0 : index
    %c0_22 = arith.constant 0 : index
    %52 = vector.load %arg8[%c0_21, %c0_22] : memref<16x32xf32, #tpu.memory_space<vmem>>, vector<16x32xf32>
    %53 = arith.truncf %51 : vector<16x128xf32> to vector<16x128xbf16>
    %c0_23 = arith.constant 0 : index
    %c0_24 = arith.constant 0 : index
    %54 = vector.load %arg5[%c0_23, %c0_24] : memref<128x32xbf16, #tpu.memory_space<vmem>>, vector<128x32xbf16>
    %cst_25 = arith.constant dense<0.000000e+00> : vector<16x32xf32>
    %55 = tpu.matmul %53, %54, %cst_25 {dimension_numbers = #tpu.dot_dimension_numbers<[1], [0], [0], [1], [0, 0, 1, 1], [], []>} : vector<16x128xbf16>, vector<128x32xbf16>, vector<16x32xf32> -> vector<16x32xf32>
    %56 = arith.addf %52, %55 : vector<16x32xf32>
    %c0_26 = arith.constant 0 : index
    %c0_27 = arith.constant 0 : index
    %57 = vector.load %arg8[%c0_26, %c0_27] : memref<16x32xf32, #tpu.memory_space<vmem>>, vector<16x32xf32>
    tpu.vector_store %arg8[%c0_26, %c0_27], %56 {strides = array<i32>} : memref<16x32xf32, #tpu.memory_space<vmem>>, vector<16x32xf32>,
    %c0_i32_28 = arith.constant 0 : i32
    %58 = arith.cmpi eq, %arg1, %c0_i32_28 : i32
    %59 = arith.extui %58 : i1 to i32
    %c0_i32_29 = arith.constant 0 : i32
    %60 = arith.cmpi ne, %59, %c0_i32_29 : i32
    scf.if %60 {
      %c0_30 = arith.constant 0 : index
      %c0_31 = arith.constant 0 : index
      %61 = vector.load %arg8[%c0_30, %c0_31] : memref<16x32xf32, #tpu.memory_space<vmem>>, vector<16x32xf32>
      %c0_32 = arith.constant 0 : index
      %c0_33 = arith.constant 0 : index
      %62 = vector.load %arg6[%c0_32, %c0_33] : memref<1x32xf32, #tpu.memory_space<vmem>>, vector<1x32xf32>
      %63 = vector.broadcast %62 : vector<1x32xf32> to vector<16x32xf32>
      %64 = arith.addf %61, %63 : vector<16x32xf32>
      %c0_34 = arith.constant 0 : index
      %c0_35 = arith.constant 0 : index
      %65 = vector.load %arg7[%c0_34, %c0_35] : memref<16x32xf32, #tpu.memory_space<vmem>>, vector<16x32xf32>
      tpu.vector_store %arg7[%c0_34, %c0_35], %64 {strides = array<i32>} : memref<16x32xf32, #tpu.memory_space<vmem>>, vector<16x32xf32>,
    } else {
    }
    return
  }
  func.func @transform_0(%arg0: i32, %arg1: i32) -> (i32, i32) {
    %c0_i32 = arith.constant 0 : i32
    %c0_i32_0 = arith.constant 0 : i32
    return %arg0, %c0_i32 : i32, i32
  }
  func.func @transform_1(%arg0: i32, %arg1: i32) -> (i32, i32) {
    %c0_i32 = arith.constant 0 : i32
    %c0_i32_0 = arith.constant 0 : i32
    return %c0_i32, %arg1 : i32, i32
  }
  func.func @transform_2(%arg0: i32, %arg1: i32) -> (i32, i32) {
    %c0_i32 = arith.constant 0 : i32
    %c0_i32_0 = arith.constant 0 : i32
    return %c0_i32, %arg1 : i32, i32
  }
  func.func @transform_3(%arg0: i32, %arg1: i32) -> (i32, i32) {
    %c0_i32 = arith.constant 0 : i32
    %c0_i32_0 = arith.constant 0 : i32
    return %arg1, %c0_i32 : i32, i32
  }
  func.func @transform_4(%arg0: i32, %arg1: i32) -> (i32, i32) {
    %c0_i32 = arith.constant 0 : i32
    %c0_i32_0 = arith.constant 0 : i32
    %c0_i32_1 = arith.constant 0 : i32
    return %c0_i32, %c0_i32_0 : i32, i32
  }
  func.func @transform_5(%arg0: i32, %arg1: i32) -> (i32, i32) {
    %c0_i32 = arith.constant 0 : i32
    %c0_i32_0 = arith.constant 0 : i32
    return %arg0, %c0_i32 : i32, i32
  }
}

</mosaic_0001>

<bundles_post_ra>
// kernel: tpu_custom_call.1
= control target key start
LH: loop header
LB: loop body
LE: loop exit
PB: predicated region body
PF: predicated region fallthrough
CT: control target
= control target key end

     0   :  { %v408_v1 = vmov 0.0   ;;  %vm409_vm0 = vmmov 0   ;;  %vm26_vm1 = vcmask 261120   ;;  %s505_s0 = inlined_call_operand.vmem [shape: bf16[16,32], index: 0, kind: input, shape index: {}]   ;;  %s506_s1 = inlined_call_operand.vmem [shape: bf16[32,128], index: 1, kind: input, shape index: {}]   ;;  %s507_s2 = inlined_call_operand.vmem [shape: f32[1,128], index: 2, kind: input, shape index: {}]   ;;  %s508_s3 = inlined_call_operand.vmem [shape: bf16[128,32], index: 3, kind: input, shape index: {}]   ;;  %s509_s4 = inlined_call_operand.vmem [shape: f32[1,32], index: 4, kind: input, shape index: {}]   ;;  %s510_s5 = inlined_call_operand.hbm [shape: f32[16,32], index: 5, kind: output, shape index: {}]  }
   0x1   :  { %v365_v0 = vld [vmem:[%s506_s1] sm:$0xff]   ;;  %332 = vmatprep.subr.bf16.mxu0 %v408_v1  ;;  %340 = vmatprep.subr.bf16.mxu1 %v408_v1  ;;  %v366_v2 = vld [vmem:[%s506_s1 + $0x8] sm:$0xff]   ;;  %27 = vst.msk [vmem:[#allocation2] sm:$0xff] %vm26_vm1, %v408_v1  ;;  %28 = vst.msk [vmem:[#allocation2 + $0x8] sm:$0xff] %vm26_vm1, %v408_v1 }
   0x2   :  { %333 = vmatpush3.bf16.msra.mxu0 %v365_v0  ;;  %336 = vmatprep.mubr.msk.bf16.mxu0 %vm409_vm0, %v408_v1  ;;  %v367_v3 = vld [vmem:[%s505_s0] sm:$0xff]  }
   0x3   :  { %334 = vmatprep.subr.bf16.mxu0 %v408_v1  ;;  %356 = vmatprep.mubr.msk.bf16.mxu1 %vm409_vm0, %v408_v1 }
   0x6   :  { %335 = vmatpush3.bf16.msra.mxu0 %v366_v2 }
   0x7   :  { %10 = vsyncpa [#allocation4], 0  ;;  %v368_v4 = vld [vmem:[%s508_s3] sm:$0xff]   ;;  %v369_v5 = vld [vmem:[%s508_s3 + $0x8] sm:$0xff]   ;;  %s410_s15 = smov [#allocation3]  }
   0x8   :  { %341 = vmatpush3.bf16.msra.mxu1 %v368_v4  ;;  %v370_v6 = vld [vmem:[%s508_s3 + $0x10] sm:$0xff]   ;;  %v371_v7 = vld [vmem:[%s508_s3 + $0x18] sm:$0xff]   ;;  %v372_v8 = vld [vmem:[%s508_s3 + $0x20] sm:$0xff]   ;;  %s295_s16 = sshll.u32 %s410_s15, 4  ;;  %s296_s16 = int_to_ptr.vmem [resolvable:$true] %s295_s16 }
   0x9   :  { %337 = vmatmul.mubr.msk.bf16.vlgmr.msra.gmra.mrb[0].mxu0 %vm26_vm1, %v367_v3  ;;  %342 = vmatprep.subr.bf16.mxu1 %v408_v1  ;;  %v373_v9 = vld [vmem:[%s508_s3 + $0x28] sm:$0xff]   ;;  %v374_v10 = vld [vmem:[%s508_s3 + $0x30] sm:$0xff]   ;;  %v375_v11 = vld [vmem:[%s508_s3 + $0x38] sm:$0xff]   ;;  %s384_s17 = scalar_lea.vmem %s296_s16, 256  ;;  %p389_p1 = scmp.lt.s32.totalorder %s296_s16, %s296_s16 }
   0xa   :  { %v306_v12 = vld [vmem:[%s507_s2] ss:$0 sm:$0xff]  ;;  %p385_p0 = scmp.ne.s32.totalorder %s296_s16, %s384_s17  ;;  %p390_p2 = scmp.lt.s32.totalorder %s384_s17, %s384_s17 }
   0xc   :  { %343 = vmatpush3.bf16.msra.mxu1 %v369_v5  ;;  %p391_p3 = por %p390_p2, %p389_p1 }
   0xd   :  { %344 = vmatprep.subr.bf16.mxu1 %v408_v1 }
   0xe   :  { %p392_p4 = pnand %p391_p3, %p385_p0 }
  0x10   :  { %345 = vmatpush3.bf16.msra.mxu1 %v370_v6 }
  0x11   :  { %346 = vmatprep.subr.bf16.mxu1 %v408_v1 }
  0x14   :  { %347 = vmatpush3.bf16.msra.mxu1 %v371_v7 }
  0x15   :  { %348 = vmatprep.subr.bf16.mxu1 %v408_v1 }
  0x18   :  { %349 = vmatpush3.bf16.msra.mxu1 %v372_v8 }
  0x19   :  { %350 = vmatprep.subr.bf16.mxu1 %v408_v1 }
  0x1c   :  { %351 = vmatpush3.bf16.msra.mxu1 %v373_v9 }
  0x1d   :  { %352 = vmatprep.subr.bf16.mxu1 %v408_v1 }
  0x20   :  { %353 = vmatpush3.bf16.msra.mxu1 %v374_v10 }
  0x21   :  { %354 = vmatprep.subr.bf16.mxu1 %v408_v1 }
  0x24   :  { %355 = vmatpush3.bf16.msra.mxu1 %v375_v11 }
  0xdc   :  { %v97_v13 = vpop.f32.mrb[0].mxu0 }
  0xdd   :  { %v482_v14 = vadd.f32 %v306_v12, %v97_v13  ;;  %v338_v15 = vpop.f32.mrb[1].mxu0 }
  0xde   :  { %v100_v16 = vpop.f32.mrb[2].mxu0  ;;  %v163_v15 = vld [vmem:[#allocation2 + $0x8] sm:$0xff] }
  0xdf   :  { %v106_v17 = vmul.f32 0.70710677, %v482_v14  ;;  %v101_v18 = vadd.f32 %v306_v12, %v100_v16  ;;  %v339_v19 = vpop.f32.mrb[3].mxu0  ;;  %v104_v6 = vmul.f32 0.5, %v482_v14  ;;  %v162_v12 = vld [vmem:[#allocation2] sm:$0xff] }
  0xe0   :  { %v319_v14 = vld [vmem:[%s509_s4] ss:$0 sm:$0xff] }
  0xe1   :  { %v108_v20 = vand.u32 2147483647, %v106_v17  ;;  %v107_v21 = vmul.f32 0.70710677, %v101_v18  ;;  %vm152_vm2 = vcmp.ge.f32.partialorder %v106_v17, 0.0  ;;  %v105_v7 = vmul.f32 0.5, %v101_v18 }
  0xe3   :  { %v110_v22 = vmul.f32 0.3275911, %v108_v20  ;;  %v109_v23 = vand.u32 2147483647, %v107_v21  ;;  %v140_v29 = vsub.f32 0.0, %v108_v20  ;;  %vm153_vm3 = vcmp.ge.f32.partialorder %v107_v21, 0.0 }
  0xe5   :  { %v112_v24 = vadd.f32 1.0, %v110_v22  ;;  %v111_v25 = vmul.f32 0.3275911, %v109_v23  ;;  %v141_v34 = vsub.f32 0.0, %v109_v23  ;;  %v142_v35 = vmul.f32 %v140_v29, %v108_v20 }
  0xe7   :  { %376 = vrcp.f32 %v112_v24  ;;  %v113_v26 = vadd.f32 1.0, %v111_v25  ;;  %v143_v40 = vmul.f32 %v141_v34, %v109_v23  ;;  %v144_v41 = vmul.f32 1.442695, %v142_v35 }
  0xe9   :  { %378 = vrcp.f32 %v113_v26  ;;  %v146_v46 = vmul.f32 1.442695, %v143_v40 }
  0xea   :  { %380 = vpow2.f32 %v144_v41 }
  0xeb   :  { %382 = vpow2.f32 %v146_v46 }
  0xf1   :  { %v377_v27 = vpop.eup %376 }
  0xf2   :  { %v116_v28 = vmul.f32 %v377_v27, %v112_v24 }
  0xf3   :  { %v379_v30 = vpop.eup %378 }
  0xf4   :  { %v118_v31 = vsub.f32 2.0, %v116_v28  ;;  %v117_v32 = vmul.f32 %v379_v30, %v113_v26  ;;  %v381_v57 = vpop.eup %380 }
  0xf5   :  { %v383_v61 = vpop.eup %382 }
  0xf6   :  { %v120_v33 = vmul.f32 %v377_v27, %v118_v31  ;;  %v119_v36 = vsub.f32 2.0, %v117_v32 }
  0xf8   :  { %v122_v37 = vmul.f32 1.0614054, %v120_v33  ;;  %v121_v38 = vmul.f32 %v379_v30, %v119_v36 }
  0xfa   :  { %v124_v39 = vadd.f32 -1.4531521, %v122_v37  ;;  %v123_v42 = vmul.f32 1.0614054, %v121_v38 }
  0xfc   :  { %v126_v43 = vmul.f32 %v124_v39, %v120_v33  ;;  %v125_v44 = vadd.f32 -1.4531521, %v123_v42 }
  0xfe   :  { %v128_v45 = vadd.f32 1.4214138, %v126_v43  ;;  %v127_v47 = vmul.f32 %v125_v44, %v121_v38 }
 0x100   :  { %v130_v48 = vmul.f32 %v128_v45, %v120_v33  ;;  %v129_v49 = vadd.f32 1.4214138, %v127_v47 }
 0x102   :  { %v132_v50 = vadd.f32 -0.28449672, %v130_v48  ;;  %v131_v51 = vmul.f32 %v129_v49, %v121_v38 }
 0x104   :  { %v134_v52 = vmul.f32 %v132_v50, %v120_v33  ;;  %v133_v53 = vadd.f32 -0.28449672, %v131_v51 }
 0x106   :  { %v136_v54 = vadd.f32 0.2548296, %v134_v52  ;;  %v135_v55 = vmul.f32 %v133_v53, %v121_v38 }
 0x108   :  { %v138_v56 = vmul.f32 %v136_v54, %v120_v33  ;;  %v137_v58 = vadd.f32 0.2548296, %v135_v55 }
 0x10a   :  { %v148_v59 = vmul.f32 %v381_v57, %v138_v56  ;;  %v139_v60 = vmul.f32 %v137_v58, %v121_v38 }
 0x10c   :  { %v150_v62 = vsub.f32 1.0, %v148_v59  ;;  %v149_v63 = vmul.f32 %v383_v61, %v139_v60 }
 0x10e   :  { %v154_v0 = vsub.f32 0.0, %v150_v62  ;;  %v151_v1 = vsub.f32 1.0, %v149_v63 }
 0x110   :  { %v156_v2 = vsel %vm152_vm2, %v150_v62, %v154_v0  ;;  %v155_v3 = vsub.f32 0.0, %v151_v1 }
 0x111   :  { %v158_v4 = vadd.f32 1.0, %v156_v2 }
 0x112   :  { %v157_v5 = vsel %vm153_vm3, %v151_v1, %v155_v3 }
 0x113   :  { %v159_v8 = vadd.f32 1.0, %v157_v5  ;;  %v160_v9 = vmul.f32 %v158_v4, %v104_v6 }
 0x115   :  { %v161_v10 = vmul.f32 %v159_v8, %v105_v7 }
 0x117   :  { %v164_v11 = vpack.c.bf16 %v161_v10, %v160_v9 }
 0x119   :  { %357 = vmatmul.mubr.bf16.vlgmr.msra.gmra.mrb[0].mxu1 %v164_v11 }
 0x1ec   :  { %v263_v13 = vpop.f32.mrb[0].mxu1 }
 0x1ed   :  { %v270_v16 = vadd.f32 %v263_v13, %v162_v12  ;;  %v358_v19 = vpop.f32.mrb[1].mxu1 }
 0x1ee   :  { %v266_v17 = vpop.f32.mrb[2].mxu1 }
 0x1ef   :  { %272 = vst.msk [vmem:[#allocation2] sm:$0xff] %vm26_vm1, %v270_v16  ;;  %v271_v20 = vadd.f32 %v266_v17, %v163_v15  ;;  %v359_v22 = vpop.f32.mrb[3].mxu1 }
 0x1f1   :  { %273 = vst.msk [vmem:[#allocation2 + $0x8] sm:$0xff] %vm26_vm1, %v271_v20 }
 0x1f6   :  { %v277_v18 = vld [vmem:[#allocation2] sm:$0xff] }
 0x1f7   :  { %v286_v21 = vadd.f32 %v319_v14, %v277_v18 }
 0x1f8   :  { %v278_v23 = vld [vmem:[#allocation2 + $0x8] sm:$0xff] }
 0x1f9   :  { %v287_v24 = vadd.f32 %v319_v14, %v278_v23  ;;  %288 = vst.msk [vmem:[#allocation3] sm:$0xff] %vm26_vm1, %v286_v21 }
 0x1fb   :  { %289 = vst.msk [vmem:[#allocation3 + $0x8] sm:$0xff] %vm26_vm1, %v287_v24 }
 0x1fc   :  { %395 = shalt.err (!%p392_p4)
}
 0x1fd   :  { %s396_s19 = scalar_lea.hbm %s510_s5, 256 }
 0x1fe   :  { %p397_p5 = scmp.ne.s32.totalorder %s510_s5, %s396_s19  ;;  %p400_p6 = scmp.lt.u32.totalorder %s396_s19, %s510_s5 }
 0x200   :  { %p402_p7 = pnand %p400_p6, %p397_p5 }
 0x202   :  { %405 = shalt.err (!%p402_p7)
}
 0x203   :  { %s411_s24 = smov 128   ;;  %s412_s25 = smov 8  }
 0x204   :  { %301 = dma.vmem_to_hbm [thread:$0]  %s296_s16, 256, %s510_s5, [#allocation4], %s411_s24, %s411_s24, %s412_s25  }
 0x205   :  { %406 = dma.done.wait [#allocation4], 256  }
 0x206   :  { %407 = vsyncadd [#allocation4], 4294967040 }
 0x207   :  { %305 = vsyncpa [#allocation4], 1 }

</bundles_post_ra>
